<compile_context>
chip_gen: v6e
topology: v6e:2x2x1
jax: 0.10.0
libtpu: 0.0.40
codegen_flags: <defaults>
</compile_context>

<pallas_src>
import jax
import jax.numpy as jnp
from jax.experimental import pallas as pl
from jax.experimental.pallas import tpu as pltpu


# ----------------------------- kernel math helpers --------------------------

def _sigmoid(x):
    return 1.0 / (1.0 + jnp.exp(-x))


def _softplus(x):
    # numerically stable: softplus(x) = max(x, 0) + log1p(exp(-|x|))
    return jnp.maximum(x, 0.0) + jnp.log1p(jnp.exp(-jnp.abs(x)))


# ----------------------------------- kernel ---------------------------------

def understanding_kernel(x_ref, w_ref, p_ref, o_ref, acc_ref):
    k = pl.program_id(1)

    @pl.when(k == 0)
    def _():
        acc_ref[...] = jnp.zeros_like(acc_ref)

    # (B, tk) @ (tk, tn) on the MXU, bf16 inputs, f32 accumulation.
    acc_ref[...] += jnp.dot(
        x_ref[...].astype(jnp.bfloat16),
        w_ref[...],
        preferred_element_type=jnp.float32,
    )

    @pl.when(k == pl.num_programs(1) - 1)
    def _():
        params = p_ref[...]                 # (8, tn) f32, one packed VMEM tile
        raw_pk = params[0:1, :]
        raw_cf = params[1:2, :]
        raw_cc = params[2:3, :]
        raw_tf = params[3:4, :]
        raw_rs = params[4:5, :]
        raw_ef = params[5:6, :]
        raw_at = params[6:7, :]
        bias = params[7:8, :]

        # constrain_parameters()
        P = _sigmoid(raw_pk)
        K_ = _sigmoid(raw_cf)
        C = _sigmoid(raw_cc)
        T = _softplus(raw_tf) + 0.1
        R = _softplus(raw_rs) + 1.0
        a = _sigmoid(raw_at)

        # E**a with E = sigmoid(raw_ef):
        #   log(sigmoid(z)) = -softplus(-z)  ->  E**a = exp(-a * softplus(-z))
        env_attention = jnp.exp(-a * _softplus(-raw_ef))

        # U = (P*K*C)/(T*R) * E**a   (approx rcp -> EUP slot, otherwise idle)
        u = (P * K_ * C) * pl.reciprocal(T * R, approx=True) * env_attention

        y = acc_ref[...] + bias
        o_ref[...] = (u * y).astype(o_ref.dtype)


# ------------------------------ host-side setup ------------------------------

def _choose_tiles(K, H):
    """Pick lane (tn) and contraction (tk) tiles; return (tn, tk, K_padded)."""
    if H <= 512:
        tn = H
    elif H % 512 == 0:
        tn = 512
    elif H % 256 == 0:
        tn = 256
    elif H % 128 == 0:
        tn = 128
    else:
        tn = H  # odd H: single full-extent lane block
    if K <= 2048:
        tk, Kp = K, K
    else:
        tk = 1024
        Kp = pl.cdiv(K, tk) * tk
    return tn, tk, Kp


def prepare_weight(w):
    """One-time setup (outside the hot path): nn.Linear weight [H, In] ->
    transposed [In, H], zero-padded along the contraction dim if it will be
    tiled, and cast to bf16 so the dominant HBM stream is half-width."""
    H, K = w.shape
    _, _, Kp = _choose_tiles(K, H)
    w_t = w.T
    if Kp != K:
        w_t = jnp.pad(w_t, ((0, Kp - K), (0, 0)))
    return w_t.astype(jnp.bfloat16)


def pack_params(pk, cf, cc, tf, rs, ef, at, bias):
    """One-time setup: rows 0..6 = raw per-unit parameters, row 7 = linear
    bias -> exactly one (8, H) f32 tile, one DMA instead of eight."""
    return jnp.stack([pk, cf, cc, tf, rs, ef, at, bias], axis=0).astype(jnp.float32)


def understanding_forward(x, w_t_bf16, packed_params):
    B, K = x.shape
    Kp, H = w_t_bf16.shape
    tn, tk, Kp_expect = _choose_tiles(K, H)
    assert Kp == Kp_expect, "weight was prepared for a different input_size"
    if Kp != K:
        x = jnp.pad(x, ((0, 0), (0, Kp - K)))  # zero rows in w make this exact
    nh, nk = H // tn, Kp // tk

    grid_spec = pltpu.PrefetchScalarGridSpec(
        num_scalar_prefetch=0,
        grid=(nh, nk),
        in_specs=[
            pl.BlockSpec((B, tk), lambda j, k: (0, k)),      # activations
            pl.BlockSpec((tk, tn), lambda j, k: (k, j)),     # bf16 weight tile
            pl.BlockSpec((8, tn), lambda j, k: (0, j)),      # packed params+bias
        ],
        out_specs=pl.BlockSpec((B, tn), lambda j, k: (0, j)),
        scratch_shapes=[pltpu.VMEM((B, tn), jnp.float32)],
    )
    return pl.pallas_call(
        understanding_kernel,
        out_shape=jax.ShapeDtypeStruct((B, H), jnp.float32),
        grid_spec=grid_spec,
        compiler_params=pltpu.CompilerParams(
            dimension_semantics=("parallel", "arbitrary"),
            vmem_limit_bytes=32 * 1024 * 1024,
        ),
    )(x, w_t_bf16, packed_params)


# --------------------------------- reference ---------------------------------

def reference(x, w, b, pk, cf, cc, tf, rs, ef, at):
    """Pure-f32 JAX transcription of the PyTorch forward."""
    y = x @ w.T + b
    P = jax.nn.sigmoid(pk)
    K_ = jax.nn.sigmoid(cf)
    C = jax.nn.sigmoid(cc)
    T = jax.nn.softplus(tf) + 0.1
    R = jax.nn.softplus(rs) + 1.0
    E = jax.nn.sigmoid(ef)
    a = jax.nn.sigmoid(at)
    u = (P * K_ * C) / (T * R) * jnp.power(E, a)
    return u * y


# ------------------------------------ main ------------------------------------

if __name__ == "__main__":
    input_size = 784
    hidden_size = 256
    batch = 8

    key = jax.random.PRNGKey(0)
    ks = jax.random.split(key, 10)

    # deterministic synthetic parameters (torch.rand -> uniform[0,1))
    pk = jax.random.uniform(ks[0], (hidden_size,), jnp.float32)
    cf = jax.random.uniform(ks[1], (hidden_size,), jnp.float32)
    cc = jax.random.uniform(ks[2], (hidden_size,), jnp.float32)
    tf = jax.random.uniform(ks[3], (hidden_size,), jnp.float32)
    rs = jax.random.uniform(ks[4], (hidden_size,), jnp.float32)
    ef = jax.random.uniform(ks[5], (hidden_size,), jnp.float32)
    at = jax.random.uniform(ks[6], (hidden_size,), jnp.float32)

    # nn.Linear init: uniform(-1/sqrt(in), 1/sqrt(in)) for weight [H, In], bias [H]
    bound = 1.0 / (input_size ** 0.5)
    w = jax.random.uniform(ks[7], (hidden_size, input_size), jnp.float32,
                           minval=-bound, maxval=bound)
    b = jax.random.uniform(ks[8], (hidden_size,), jnp.float32,
                           minval=-bound, maxval=bound)

    x = jax.random.uniform(ks[9], (batch, input_size), jnp.float32)

    # One-time setup outside the hot path (no per-call transpose, bf16 weight,
    # single packed parameter tile).
    w_t_bf16 = prepare_weight(w)
    packed = pack_params(pk, cf, cc, tf, rs, ef, at, b)

    out = understanding_forward(x, w_t_bf16, packed)
    out = jax.block_until_ready(out)

    ref = reference(x, w, b, pk, cf, cc, tf, rs, ef, at)
    assert out.shape == (batch, hidden_size)
    # Tolerance relaxed vs. the pure-f32 reference because the matmul inputs
    # are bf16 (f32 accumulation) and 1/(T*R) uses the EUP approx reciprocal.
    assert jnp.allclose(out, ref, atol=1e-2, rtol=1e-2), (
        "mismatch vs reference; max abs diff = "
        f"{float(jnp.max(jnp.abs(out - ref)))}")

    print("KERNEL_OK")
</pallas_src>

<mosaic_0001>
module attributes {stable_mosaic.version = 11 : i64} {
  func.func @understanding_kernel(%arg0: i32, %arg1: i32, %arg2: memref<8x784xf32, #tpu.memory_space<vmem>>, %arg3: memref<784x256xbf16, #tpu.memory_space<vmem>>, %arg4: memref<8x256xf32, #tpu.memory_space<vmem>>, %arg5: memref<8x256xf32, #tpu.memory_space<vmem>>, %arg6: memref<8x256xf32, #tpu.memory_space<vmem>>) attributes {dimension_semantics = [#tpu.dimension_semantics<parallel>, #tpu.dimension_semantics<arbitrary>], iteration_bounds = array<i64: 1, 1>, scalar_prefetch = 0 : i64, scratch_operands = 1 : i64, tpu.core_type = #tpu.core_type<tc>, window_params = [{transform_indices = @transform_0, window_bounds = array<i64: 8, 784>}, {transform_indices = @transform_1, window_bounds = array<i64: 784, 256>}, {transform_indices = @transform_2, window_bounds = array<i64: 8, 256>}, {transform_indices = @transform_3, window_bounds = array<i64: 8, 256>}]} {
    %c0_i32 = arith.constant 0 : i32
    %0 = arith.cmpi eq, %arg1, %c0_i32 : i32
    %1 = arith.extui %0 : i1 to i32
    %c0_i32_0 = arith.constant 0 : i32
    %2 = arith.cmpi ne, %1, %c0_i32_0 : i32
    scf.if %2 {
      %cst_10 = arith.constant 0.000000e+00 : f32
      %13 = vector.broadcast %cst_10 : f32 to vector<8x256xf32>
      %c0_11 = arith.constant 0 : index
      %c0_12 = arith.constant 0 : index
      %14 = vector.load %arg6[%c0_11, %c0_12] : memref<8x256xf32, #tpu.memory_space<vmem>>, vector<8x256xf32>
      tpu.vector_store %arg6[%c0_11, %c0_12], %13 {strides = array<i32>} : memref<8x256xf32, #tpu.memory_space<vmem>>, vector<8x256xf32>,
    } else {
    }
    %c0 = arith.constant 0 : index
    %c0_1 = arith.constant 0 : index
    %3 = vector.load %arg6[%c0, %c0_1] : memref<8x256xf32, #tpu.memory_space<vmem>>, vector<8x256xf32>
    %c0_2 = arith.constant 0 : index
    %c0_3 = arith.constant 0 : index
    %4 = vector.load %arg2[%c0_2, %c0_3] : memref<8x784xf32, #tpu.memory_space<vmem>>, vector<8x784xf32>
    %5 = arith.truncf %4 : vector<8x784xf32> to vector<8x784xbf16>
    %c0_4 = arith.constant 0 : index
    %c0_5 = arith.constant 0 : index
    %6 = vector.load %arg3[%c0_4, %c0_5] : memref<784x256xbf16, #tpu.memory_space<vmem>>, vector<784x256xbf16>
    %cst = arith.constant dense<0.000000e+00> : vector<8x256xf32>
    %7 = tpu.matmul %5, %6, %cst {dimension_numbers = #tpu.dot_dimension_numbers<[1], [0], [0], [1], [0, 0, 1, 1], [], []>} : vector<8x784xbf16>, vector<784x256xbf16>, vector<8x256xf32> -> vector<8x256xf32>
    %8 = arith.addf %3, %7 : vector<8x256xf32>
    %c0_6 = arith.constant 0 : index
    %c0_7 = arith.constant 0 : index
    %9 = vector.load %arg6[%c0_6, %c0_7] : memref<8x256xf32, #tpu.memory_space<vmem>>, vector<8x256xf32>
    tpu.vector_store %arg6[%c0_6, %c0_7], %8 {strides = array<i32>} : memref<8x256xf32, #tpu.memory_space<vmem>>, vector<8x256xf32>,
    %c0_i32_8 = arith.constant 0 : i32
    %10 = arith.cmpi eq, %arg1, %c0_i32_8 : i32
    %11 = arith.extui %10 : i1 to i32
    %c0_i32_9 = arith.constant 0 : i32
    %12 = arith.cmpi ne, %11, %c0_i32_9 : i32
    scf.if %12 {
      %c0_10 = arith.constant 0 : index
      %c0_11 = arith.constant 0 : index
      %13 = vector.load %arg4[%c0_10, %c0_11] : memref<8x256xf32, #tpu.memory_space<vmem>>, vector<8x256xf32>
      %14 = vector.extract_strided_slice %13 {offsets = [0, 0], sizes = [1, 256], strides = [1, 1]} : vector<8x256xf32> to vector<1x256xf32>
      %15 = vector.extract_strided_slice %13 {offsets = [1, 0], sizes = [1, 256], strides = [1, 1]} : vector<8x256xf32> to vector<1x256xf32>
      %16 = vector.extract_strided_slice %13 {offsets = [2, 0], sizes = [1, 256], strides = [1, 1]} : vector<8x256xf32> to vector<1x256xf32>
      %17 = vector.extract_strided_slice %13 {offsets = [3, 0], sizes = [1, 256], strides = [1, 1]} : vector<8x256xf32> to vector<1x256xf32>
      %18 = vector.extract_strided_slice %13 {offsets = [4, 0], sizes = [1, 256], strides = [1, 1]} : vector<8x256xf32> to vector<1x256xf32>
      %19 = vector.extract_strided_slice %13 {offsets = [5, 0], sizes = [1, 256], strides = [1, 1]} : vector<8x256xf32> to vector<1x256xf32>
      %20 = vector.extract_strided_slice %13 {offsets = [6, 0], sizes = [1, 256], strides = [1, 1]} : vector<8x256xf32> to vector<1x256xf32>
      %21 = vector.extract_strided_slice %13 {offsets = [7, 0], sizes = [1, 256], strides = [1, 1]} : vector<8x256xf32> to vector<1x256xf32>
      %cst_12 = arith.constant 0.000000e+00 : f32
      %22 = vector.broadcast %cst_12 : f32 to vector<1x256xf32>
      %23 = arith.subf %22, %14 : vector<1x256xf32>
      %24 = math.exp %23 : vector<1x256xf32>
      %cst_13 = arith.constant 1.000000e+00 : f32
      %25 = vector.broadcast %cst_13 : f32 to vector<1x256xf32>
      %26 = arith.addf %25, %24 : vector<1x256xf32>
      %cst_14 = arith.constant 1.000000e+00 : f32
      %27 = vector.broadcast %cst_14 : f32 to vector<1x256xf32>
      %28 = arith.divf %27, %26 : vector<1x256xf32>
      %cst_15 = arith.constant 0.000000e+00 : f32
      %29 = vector.broadcast %cst_15 : f32 to vector<1x256xf32>
      %30 = arith.subf %29, %15 : vector<1x256xf32>
      %31 = math.exp %30 : vector<1x256xf32>
      %cst_16 = arith.constant 1.000000e+00 : f32
      %32 = vector.broadcast %cst_16 : f32 to vector<1x256xf32>
      %33 = arith.addf %32, %31 : vector<1x256xf32>
      %cst_17 = arith.constant 1.000000e+00 : f32
      %34 = vector.broadcast %cst_17 : f32 to vector<1x256xf32>
      %35 = arith.divf %34, %33 : vector<1x256xf32>
      %cst_18 = arith.constant 0.000000e+00 : f32
      %36 = vector.broadcast %cst_18 : f32 to vector<1x256xf32>
      %37 = arith.subf %36, %16 : vector<1x256xf32>
      %38 = math.exp %37 : vector<1x256xf32>
      %cst_19 = arith.constant 1.000000e+00 : f32
      %39 = vector.broadcast %cst_19 : f32 to vector<1x256xf32>
      %40 = arith.addf %39, %38 : vector<1x256xf32>
      %cst_20 = arith.constant 1.000000e+00 : f32
      %41 = vector.broadcast %cst_20 : f32 to vector<1x256xf32>
      %42 = arith.divf %41, %40 : vector<1x256xf32>
      %cst_21 = arith.constant 0.000000e+00 : f32
      %43 = vector.broadcast %cst_21 : f32 to vector<1x256xf32>
      %44 = arith.maximumf %17, %43 : vector<1x256xf32>
      %45 = math.absf %17 : vector<1x256xf32>
      %cst_22 = arith.constant 0.000000e+00 : f32
      %46 = vector.broadcast %cst_22 : f32 to vector<1x256xf32>
      %47 = arith.subf %46, %45 : vector<1x256xf32>
      %48 = math.exp %47 : vector<1x256xf32>
      %49 = math.log1p %48 : vector<1x256xf32>
      %50 = arith.addf %44, %49 : vector<1x256xf32>
      %cst_23 = arith.constant 1.000000e-01 : f32
      %51 = vector.broadcast %cst_23 : f32 to vector<1x256xf32>
      %52 = arith.addf %50, %51 : vector<1x256xf32>
      %cst_24 = arith.constant 0.000000e+00 : f32
      %53 = vector.broadcast %cst_24 : f32 to vector<1x256xf32>
      %54 = arith.maximumf %18, %53 : vector<1x256xf32>
      %55 = math.absf %18 : vector<1x256xf32>
      %cst_25 = arith.constant 0.000000e+00 : f32
      %56 = vector.broadcast %cst_25 : f32 to vector<1x256xf32>
      %57 = arith.subf %56, %55 : vector<1x256xf32>
      %58 = math.exp %57 : vector<1x256xf32>
      %59 = math.log1p %58 : vector<1x256xf32>
      %60 = arith.addf %54, %59 : vector<1x256xf32>
      %cst_26 = arith.constant 1.000000e+00 : f32
      %61 = vector.broadcast %cst_26 : f32 to vector<1x256xf32>
      %62 = arith.addf %60, %61 : vector<1x256xf32>
      %cst_27 = arith.constant 0.000000e+00 : f32
      %63 = vector.broadcast %cst_27 : f32 to vector<1x256xf32>
      %64 = arith.subf %63, %20 : vector<1x256xf32>
      %65 = math.exp %64 : vector<1x256xf32>
      %cst_28 = arith.constant 1.000000e+00 : f32
      %66 = vector.broadcast %cst_28 : f32 to vector<1x256xf32>
      %67 = arith.addf %66, %65 : vector<1x256xf32>
      %cst_29 = arith.constant 1.000000e+00 : f32
      %68 = vector.broadcast %cst_29 : f32 to vector<1x256xf32>
      %69 = arith.divf %68, %67 : vector<1x256xf32>
      %cst_30 = arith.constant 0.000000e+00 : f32
      %70 = vector.broadcast %cst_30 : f32 to vector<1x256xf32>
      %71 = arith.subf %70, %69 : vector<1x256xf32>
      %cst_31 = arith.constant 0.000000e+00 : f32
      %72 = vector.broadcast %cst_31 : f32 to vector<1x256xf32>
      %73 = arith.subf %72, %19 : vector<1x256xf32>
      %cst_32 = arith.constant 0.000000e+00 : f32
      %74 = vector.broadcast %cst_32 : f32 to vector<1x256xf32>
      %75 = arith.maximumf %73, %74 : vector<1x256xf32>
      %76 = math.absf %73 : vector<1x256xf32>
      %cst_33 = arith.constant 0.000000e+00 : f32
      %77 = vector.broadcast %cst_33 : f32 to vector<1x256xf32>
      %78 = arith.subf %77, %76 : vector<1x256xf32>
      %79 = math.exp %78 : vector<1x256xf32>
      %80 = math.log1p %79 : vector<1x256xf32>
      %81 = arith.addf %75, %80 : vector<1x256xf32>
      %82 = arith.mulf %71, %81 : vector<1x256xf32>
      %83 = math.exp %82 : vector<1x256xf32>
      %84 = arith.mulf %28, %35 : vector<1x256xf32>
      %85 = arith.mulf %84, %42 : vector<1x256xf32>
      %86 = arith.mulf %52, %62 : vector<1x256xf32>
      %87 = tpu.reciprocal %86 {approx = true} : vector<1x256xf32> -> vector<1x256xf32>
      %88 = arith.mulf %85, %87 : vector<1x256xf32>
      %89 = arith.mulf %88, %83 : vector<1x256xf32>
      %c0_34 = arith.constant 0 : index
      %c0_35 = arith.constant 0 : index
      %90 = vector.load %arg6[%c0_34, %c0_35] : memref<8x256xf32, #tpu.memory_space<vmem>>, vector<8x256xf32>
      %91 = vector.broadcast %21 : vector<1x256xf32> to vector<8x256xf32>
      %92 = arith.addf %90, %91 : vector<8x256xf32>
      %93 = vector.broadcast %89 : vector<1x256xf32> to vector<8x256xf32>
      %94 = arith.mulf %93, %92 : vector<8x256xf32>
      %c0_36 = arith.constant 0 : index
      %c0_37 = arith.constant 0 : index
      %95 = vector.load %arg5[%c0_36, %c0_37] : memref<8x256xf32, #tpu.memory_space<vmem>>, vector<8x256xf32>
      tpu.vector_store %arg5[%c0_36, %c0_37], %94 {strides = array<i32>} : memref<8x256xf32, #tpu.memory_space<vmem>>, vector<8x256xf32>,
    } else {
    }
    return
  }
  func.func @transform_0(%arg0: i32, %arg1: i32) -> (i32, i32) {
    %c0_i32 = arith.constant 0 : i32
    %c0_i32_0 = arith.constant 0 : i32
    return %c0_i32, %arg1 : i32, i32
  }
  func.func @transform_1(%arg0: i32, %arg1: i32) -> (i32, i32) {
    %c0_i32 = arith.constant 0 : i32
    return %arg1, %arg0 : i32, i32
  }
  func.func @transform_2(%arg0: i32, %arg1: i32) -> (i32, i32) {
    %c0_i32 = arith.constant 0 : i32
    %c0_i32_0 = arith.constant 0 : i32
    return %c0_i32, %arg0 : i32, i32
  }
  func.func @transform_3(%arg0: i32, %arg1: i32) -> (i32, i32) {
    %c0_i32 = arith.constant 0 : i32
    %c0_i32_0 = arith.constant 0 : i32
    return %c0_i32, %arg0 : i32, i32
  }
}

</mosaic_0001>

<bundles_post_ra>
// kernel: tpu_custom_call.1
= control target key start
LH: loop header
LB: loop body
LE: loop exit
PB: predicated region body
PF: predicated region fallthrough
CT: control target
= control target key end

     0   :  { %8 = vsyncpa [#allocation4], 0  ;;  %s1466_s0 = inlined_call_operand.hbm [shape: f32[8,784], index: 0, kind: input, shape index: {}]   ;;  %s1467_s1 = inlined_call_operand.hbm [shape: bf16[784,256], index: 1, kind: input, shape index: {}]   ;;  %s1468_s2 = inlined_call_operand.hbm [shape: f32[8,256], index: 2, kind: input, shape index: {}]   ;;  %s1469_s3 = inlined_call_operand.hbm [shape: f32[8,256], index: 3, kind: output, shape index: {}]  }
   0x1   :  { %9 = vsyncpa [#allocation7], 0 }
   0x2   :  { %10 = vsyncpa [#allocation5], 0  ;;  %s1381_s12 = smov [#allocation6]  }
   0x3   :  { %s26_s13 = sshll.u32 %s1381_s12, 4  ;;  %s27_s13 = int_to_ptr.vmem [resolvable:$true] %s26_s13 }
   0x4   :  { %s1303_s14 = scalar_lea.vmem %s27_s13, 12544  ;;  %p1308_p1 = scmp.lt.s32.totalorder %s27_s13, %s27_s13 }
   0x5   :  { %p1304_p0 = scmp.ne.s32.totalorder %s27_s13, %s1303_s14  ;;  %p1309_p2 = scmp.lt.s32.totalorder %s1303_s14, %s1303_s14 }
   0x7   :  { %p1310_p3 = por %p1309_p2, %p1308_p1 }
   0x9   :  { %p1311_p4 = pnand %p1310_p3, %p1304_p0 }
   0xb   :  { %1314 = shalt.err (!%p1311_p4)
}
   0xc   :  { %s1382_s15 = smov 128   ;;  %s1383_s16 = smov 8  }
   0xd   :  { %32 = dma.hbm_to_vmem [thread:$0]  %s1467_s1, 12544, %s27_s13, [#allocation7], %s1382_s15, %s1382_s15, %s1383_s16  }
   0xe   :  { %s1384_s19 = smov [#allocation3]   ;;  %s1385_s21 = smov [#allocation8]  }
   0xf   :  { %s17_s20 = sshll.u32 %s1384_s19, 4  ;;  %s39_s22 = sshll.u32 %s1385_s21, 4  ;;  %s18_s20 = int_to_ptr.vmem [resolvable:$true] %s17_s20  ;;  %s40_s22 = int_to_ptr.vmem [resolvable:$true] %s39_s22 }
  0x10   :  { %s1323_s23 = scalar_lea.vmem %s18_s20, 896  ;;  %p1328_p6 = scmp.lt.s32.totalorder %s18_s20, %s18_s20 }
  0x11   :  { %p1324_p5 = scmp.ne.s32.totalorder %s18_s20, %s1323_s23  ;;  %p1329_p7 = scmp.lt.s32.totalorder %s1323_s23, %s1323_s23 }
  0x13   :  { %p1330_p8 = por %p1329_p7, %p1328_p6 }
  0x15   :  { %p1331_p9 = pnand %p1330_p8, %p1324_p5 }
  0x17   :  { %1334 = shalt.err (!%p1331_p9)
}
  0x18   :  { %20 = dma.hbm_to_vmem [thread:$0]  %s1466_s0, 896, %s18_s20, [#allocation4]  }
  0x19   :  { %s1343_s26 = scalar_lea.vmem %s40_s22, 256  ;;  %p1348_p11 = scmp.lt.s32.totalorder %s40_s22, %s40_s22 }
  0x1a   :  { %p1344_p10 = scmp.ne.s32.totalorder %s40_s22, %s1343_s26  ;;  %p1349_p12 = scmp.lt.s32.totalorder %s1343_s26, %s1343_s26 }
  0x1c   :  { %p1350_p13 = por %p1349_p12, %p1348_p11 }
  0x1e   :  { %p1351_p0 = pnand %p1350_p13, %p1344_p10 }
  0x20   :  { %1354 = shalt.err (!%p1351_p0)
}
  0x21   :  { %42 = dma.hbm_to_vmem [thread:$0]  %s1468_s2, 256, %s40_s22, [#allocation7]  }
  0x22   :  { %1375 = dma.done.wait [#allocation4], 896  }
  0x23   :  { %1376 = vsyncadd [#allocation4], 4294966400 }
  0x24   :  { %1377 = dma.done.wait [#allocation7], 12800  }
  0x25   :  { %1378 = vsyncadd [#allocation7], 4294954496  ;;  %v1116_v0 = vld [vmem:[#allocation6 + $0x74] ss:$8 sps:$4 sm:$0xff]   ;;  %v1120_v2 = vld [vmem:[#allocation6 + $0x70] ss:$8 sps:$4 sm:$0xff]  }
  0x26   :  { %v1118_v1 = vld [vmem:[#allocation6 + $0x174] ss:$8 sps:$4 sm:$0xff]   ;;  %667 = vmatprep.subr.bf16.mxu0 %v1116_v0  ;;  %v1121_v3 = vld [vmem:[#allocation6 + $0x170] ss:$8 sps:$4 sm:$0xff]   ;;  %v1122_v4 = vld [vmem:[#allocation6 + $0x64] ss:$8 sps:$4 sm:$0xff]  }
  0x27   :  { %708 = vmatprep.subr.bf16.mxu1 %v1118_v1  ;;  %668 = vmatpush1.bf16.msra.mxu0 %v1120_v2  ;;  %v1124_v5 = vld [vmem:[#allocation6 + $0x164] ss:$8 sps:$4 sm:$0xff]   ;;  %v1126_v6 = vld [vmem:[#allocation6 + $0x60] ss:$8 sps:$4 sm:$0xff]   ;;  %v1128_v8 = vld [vmem:[#allocation6 + $0x54] ss:$8 sps:$4 sm:$0xff]  }
  0x28   :  { %709 = vmatpush1.bf16.msra.mxu1 %v1121_v3  ;;  %669 = vmatprep.subr.bf16.mxu0 %v1122_v4  ;;  %v1127_v7 = vld [vmem:[#allocation6 + $0x160] ss:$8 sps:$4 sm:$0xff]   ;;  %v1130_v9 = vld [vmem:[#allocation6 + $0x154] ss:$8 sps:$4 sm:$0xff]   ;;  %v1132_v10 = vld [vmem:[#allocation6 + $0x50] ss:$8 sps:$4 sm:$0xff]  }
  0x29   :  { %710 = vmatprep.subr.bf16.mxu1 %v1124_v5  ;;  %v1133_v11 = vld [vmem:[#allocation6 + $0x150] ss:$8 sps:$4 sm:$0xff]   ;;  %v1134_v12 = vld [vmem:[#allocation6 + $0x44] ss:$8 sps:$4 sm:$0xff]   ;;  %v1138_v14 = vld [vmem:[#allocation6 + $0x40] ss:$8 sps:$4 sm:$0xff]  }
  0x2a   :  { %v1136_v13 = vld [vmem:[#allocation6 + $0x144] ss:$8 sps:$4 sm:$0xff]   ;;  %v1139_v15 = vld [vmem:[#allocation6 + $0x140] ss:$8 sps:$4 sm:$0xff]   ;;  %v1140_v16 = vld [vmem:[#allocation6 + $0x34] ss:$8 sps:$4 sm:$0xff]  }
  0x2b   :  { %670 = vmatpush1.bf16.msra.mxu0 %v1126_v6  ;;  %v1142_v17 = vld [vmem:[#allocation6 + $0x134] ss:$8 sps:$4 sm:$0xff]   ;;  %v1144_v18 = vld [vmem:[#allocation6 + $0x30] ss:$8 sps:$4 sm:$0xff]   ;;  %v1146_v20 = vld [vmem:[#allocation6 + $0x24] ss:$8 sps:$4 sm:$0xff]  }
  0x2c   :  { %711 = vmatpush1.bf16.msra.mxu1 %v1127_v7  ;;  %671 = vmatprep.subr.bf16.mxu0 %v1128_v8  ;;  %v1145_v19 = vld [vmem:[#allocation6 + $0x130] ss:$8 sps:$4 sm:$0xff]   ;;  %v1148_v21 = vld [vmem:[#allocation6 + $0x124] ss:$8 sps:$4 sm:$0xff]   ;;  %v1150_v22 = vld [vmem:[#allocation6 + $0x20] ss:$8 sps:$4 sm:$0xff]  }
  0x2d   :  { %712 = vmatprep.subr.bf16.mxu1 %v1130_v9  ;;  %v1151_v23 = vld [vmem:[#allocation6 + $0x120] ss:$8 sps:$4 sm:$0xff]   ;;  %v1152_v24 = vld [vmem:[#allocation6 + $0x14] ss:$8 sps:$4 sm:$0xff]   ;;  %v1156_v26 = vld [vmem:[#allocation6 + $0x10] ss:$8 sps:$4 sm:$0xff]  }
  0x2e   :  { %v1154_v25 = vld [vmem:[#allocation6 + $0x114] ss:$8 sps:$4 sm:$0xff]   ;;  %v1157_v27 = vld [vmem:[#allocation6 + $0x110] ss:$8 sps:$4 sm:$0xff]   ;;  %v1158_v28 = vld [vmem:[#allocation6 + $0x4] ss:$8 sps:$4 sm:$0xff]  }
  0x2f   :  { %672 = vmatpush1.bf16.msra.mxu0 %v1132_v10  ;;  %v1160_v29 = vld [vmem:[#allocation6 + $0x104] ss:$8 sps:$4 sm:$0xff]   ;;  %v1162_v30 = vld [vmem:[#allocation6] ss:$8 sps:$4 sm:$0xff]   ;;  %v1164_v32 = vld [vmem:[#allocation6 + $0xf4] ss:$8 sps:$4 sm:$0xff]  }
  0x30   :  { %713 = vmatpush1.bf16.msra.mxu1 %v1133_v11  ;;  %673 = vmatprep.subr.bf16.mxu0 %v1134_v12  ;;  %v1163_v31 = vld [vmem:[#allocation6 + $0x100] ss:$8 sps:$4 sm:$0xff]   ;;  %v1166_v33 = vld [vmem:[#allocation6 + $0x1f4] ss:$8 sps:$4 sm:$0xff]   ;;  %v1168_v34 = vld [vmem:[#allocation6 + $0xf0] ss:$8 sps:$4 sm:$0xff]  }
  0x31   :  { %714 = vmatprep.subr.bf16.mxu1 %v1136_v13  ;;  %v1169_v35 = vld [vmem:[#allocation6 + $0x1f0] ss:$8 sps:$4 sm:$0xff]   ;;  %v1170_v36 = vld [vmem:[#allocation6 + $0xe4] ss:$8 sps:$4 sm:$0xff]   ;;  %v1174_v38 = vld [vmem:[#allocation6 + $0xe0] ss:$8 sps:$4 sm:$0xff]  }
  0x32   :  { %v1172_v37 = vld [vmem:[#allocation6 + $0x1e4] ss:$8 sps:$4 sm:$0xff]   ;;  %v1175_v39 = vld [vmem:[#allocation6 + $0x1e0] ss:$8 sps:$4 sm:$0xff]   ;;  %v1176_v40 = vld [vmem:[#allocation6 + $0xd4] ss:$8 sps:$4 sm:$0xff]  }
  0x33   :  { %674 = vmatpush1.bf16.msra.mxu0 %v1138_v14  ;;  %v1178_v41 = vld [vmem:[#allocation6 + $0x1d4] ss:$8 sps:$4 sm:$0xff]   ;;  %v1180_v42 = vld [vmem:[#allocation6 + $0xd0] ss:$8 sps:$4 sm:$0xff]   ;;  %v1182_v44 = vld [vmem:[#allocation6 + $0xc4] ss:$8 sps:$4 sm:$0xff]  }
  0x34   :  { %715 = vmatpush1.bf16.msra.mxu1 %v1139_v15  ;;  %675 = vmatprep.subr.bf16.mxu0 %v1140_v16  ;;  %v1181_v43 = vld [vmem:[#allocation6 + $0x1d0] ss:$8 sps:$4 sm:$0xff]   ;;  %v1184_v45 = vld [vmem:[#allocation6 + $0x1c4] ss:$8 sps:$4 sm:$0xff]   ;;  %v1186_v47 = vld [vmem:[#allocation6 + $0xc0] ss:$8 sps:$4 sm:$0xff]  }
  0x35   :  { %716 = vmatprep.subr.bf16.mxu1 %v1142_v17  ;;  %v62_v46 = vld [vmem:[#allocation3 + $0x8] sm:$0xff]  ;;  %v1187_v48 = vld [vmem:[#allocation6 + $0x1c0] ss:$8 sps:$4 sm:$0xff]   ;;  %v1194_v56 = vld [vmem:[#allocation6 + $0xa4] ss:$8 sps:$4 sm:$0xff]   ;;  %vm663_vm0 = vcmask 130048  }
  0x36   :  { %v69_v49 = vpack.c.bf16 %v62_v46, %v62_v46  ;;  %v64_v50 = vld [vmem:[#allocation3 + $0x18] sm:$0xff]  ;;  %v1188_v51 = vld [vmem:[#allocation6 + $0xb4] ss:$8 sps:$4 sm:$0xff]   ;;  %v1192_v54 = vld [vmem:[#allocation6 + $0xb0] ss:$8 sps:$4 sm:$0xff]   ;;  %s1387_s0 = smov [#allocation9]  }
  0x37   :  { %676 = vmatpush1.bf16.msra.mxu0 %v1144_v18  ;;  %v71_v52 = vpack.c.bf16 %v64_v50, %v64_v50  ;;  %v1190_v53 = vld [vmem:[#allocation6 + $0x1b4] ss:$8 sps:$4 sm:$0xff]   ;;  %v1193_v55 = vld [vmem:[#allocation6 + $0x1b0] ss:$8 sps:$4 sm:$0xff]   ;;  %v1196_v57 = vld [vmem:[#allocation6 + $0x1a4] ss:$8 sps:$4 sm:$0xff]  }
  0x38   :  { %717 = vmatpush1.bf16.msra.mxu1 %v1145_v19  ;;  %677 = vmatprep.subr.bf16.mxu0 %v1146_v20  ;;  %v1198_v58 = vld [vmem:[#allocation6 + $0xa0] ss:$8 sps:$4 sm:$0xff]   ;;  %v1200_v60 = vld [vmem:[#allocation6 + $0x94] ss:$8 sps:$4 sm:$0xff]   ;;  %v1204_v62 = vld [vmem:[#allocation6 + $0x90] ss:$8 sps:$4 sm:$0xff]  }
  0x39   :  { %718 = vmatprep.subr.bf16.mxu1 %v1148_v21  ;;  %699 = vmatprep.mubr.bf16.mxu0 %v69_v49  ;;  %v1199_v59 = vld [vmem:[#allocation6 + $0x1a0] ss:$8 sps:$4 sm:$0xff]   ;;  %v1202_v61 = vld [vmem:[#allocation6 + $0x194] ss:$8 sps:$4 sm:$0xff]   ;;  %v1205_v63 = vld [vmem:[#allocation6 + $0x190] ss:$8 sps:$4 sm:$0xff]  }
  0x3a   :  { %740 = vmatprep.mubr.bf16.mxu1 %v71_v52  ;;  %v1206_v0 = vld [vmem:[#allocation6 + $0x84] ss:$8 sps:$4 sm:$0xff]   ;;  %v1210_v2 = vld [vmem:[#allocation6 + $0x80] ss:$8 sps:$4 sm:$0xff]   ;;  %v63_v5 = vld [vmem:[#allocation3 + $0x10] sm:$0xff]  ;;  %v1386_v18 = vmov 0  }
  0x3b   :  { %678 = vmatpush1.bf16.msra.mxu0 %v1150_v22  ;;  %v1208_v1 = vld [vmem:[#allocation6 + $0x184] ss:$8 sps:$4 sm:$0xff]   ;;  %v1211_v3 = vld [vmem:[#allocation6 + $0x180] ss:$8 sps:$4 sm:$0xff]   ;;  %v1214_v6 = vld [vmem:[#allocation6 + $0x274] ss:$8 sps:$4 sm:$0xff]   ;;  %v70_v8 = vpack.c.bf16 %v63_v5, %v63_v5 }
  0x3c   :  { %719 = vmatpush1.bf16.msra.mxu1 %v1151_v23  ;;  %679 = vmatprep.subr.bf16.mxu0 %v1152_v24  ;;  %v61_v4 = vld [vmem:[#allocation3] sm:$0xff]  ;;  %v1212_v9 = vld [vmem:[#allocation6 + $0x270] ss:$8 sps:$4 sm:$0xff]   ;;  %v1220_v17 = vld [vmem:[#allocation6 + $0x254] ss:$8 sps:$4 sm:$0xff]   ;;  %s1000_s2 = sshll.u32 %s1387_s0, 4  ;;  %s1001_s2 = int_to_ptr.vmem [resolvable:$true] %s1000_s2 }
  0x3d   :  { %720 = vmatprep.subr.bf16.mxu1 %v1154_v25  ;;  %v68_v7 = vpack.c.bf16 %v61_v4, %v61_v4  ;;  %v1217_v10 = vld [vmem:[#allocation6 + $0x264] ss:$8 sps:$4 sm:$0xff]   ;;  %v1257_v11 = vld [vmem:[#allocation6 + $0x300] ss:$8 sps:$4 sm:$0xff]   ;;  %v66_v13 = vld [vmem:[#allocation3 + $0x28] sm:$0xff]  ;;  %s1355_s28 = scalar_lea.vmem %s1001_s2, 256  ;;  %p1360_p2 = scmp.lt.s32.totalorder %s1001_s2, %s1001_s2 }
  0x3e   :  { %v1259_v12 = vld [vmem:[#allocation6 + $0x304] ss:$8 sps:$4 sm:$0xff]   ;;  %v1215_v14 = vld [vmem:[#allocation6 + $0x260] ss:$8 sps:$4 sm:$0xff]   ;;  %v67_v15 = vld [vmem:[#allocation3 + $0x30] sm:$0xff]  ;;  %v73_v16 = vpack.c.bf16 %v66_v13, %v66_v13  ;;  %p1356_p1 = scmp.ne.s32.totalorder %s1001_s2, %s1355_s28  ;;  %p1361_p3 = scmp.lt.s32.totalorder %s1355_s28, %s1355_s28 }
  0x3f   :  { %680 = vmatpush1.bf16.msra.mxu0 %v1156_v26  ;;  %v74_v19 = vpack.c.bf16 %v67_v15, %v67_v15  ;;  %v1218_v20 = vld [vmem:[#allocation6 + $0x250] ss:$8 sps:$4 sm:$0xff]   ;;  %v1223_v21 = vld [vmem:[#allocation6 + $0x244] ss:$8 sps:$4 sm:$0xff]   ;;  %v1221_v22 = vld [vmem:[#allocation6 + $0x240] ss:$8 sps:$4 sm:$0xff]  }
  0x40   :  { %721 = vmatpush1.bf16.msra.mxu1 %v1157_v27  ;;  %681 = vmatprep.subr.bf16.mxu0 %v1158_v28  ;;  %v1226_v23 = vld [vmem:[#allocation6 + $0x234] ss:$8 sps:$4 sm:$0xff]   ;;  %v1224_v24 = vld [vmem:[#allocation6 + $0x230] ss:$8 sps:$4 sm:$0xff]   ;;  %v1229_v25 = vld [vmem:[#allocation6 + $0x224] ss:$8 sps:$4 sm:$0xff]   ;;  %p1362_p4 = por %p1361_p3, %p1360_p2 }
  0x41   :  { %722 = vmatprep.subr.bf16.mxu1 %v1160_v29  ;;  %v1227_v26 = vld [vmem:[#allocation6 + $0x220] ss:$8 sps:$4 sm:$0xff]   ;;  %v1232_v27 = vld [vmem:[#allocation6 + $0x214] ss:$8 sps:$4 sm:$0xff]   ;;  %v1230_v28 = vld [vmem:[#allocation6 + $0x210] ss:$8 sps:$4 sm:$0xff]  }
  0x42   :  { %v1235_v29 = vld [vmem:[#allocation6 + $0x204] ss:$8 sps:$4 sm:$0xff]   ;;  %v1260_v46 = vld [vmem:[#allocation6 + $0x280] ss:$8 sps:$4 sm:$0xff]   ;;  %v1417_v49 = vld [vmem:[#allocation8] sm:$0xff]  ;;  %p1363_p5 = pnand %p1362_p4, %p1356_p1 }
  0x43   :  { %682 = vmatpush1.bf16.msra.mxu0 %v1162_v30  ;;  %v1233_v30 = vld [vmem:[#allocation6 + $0x200] ss:$8 sps:$4 sm:$0xff]   ;;  %v1419_v50 = vld [vmem:[#allocation8 + $0x8] sm:$0xff]  ;;  %v854_v52 = vand.u32 2147483647, %v1417_v49 }
  0x44   :  { %723 = vmatpush1.bf16.msra.mxu1 %v1163_v31  ;;  %683 = vmatprep.subr.bf16.mxu0 %v1164_v32  ;;  %v1238_v31 = vld [vmem:[#allocation6 + $0x2f4] ss:$8 sps:$4 sm:$0xff]   ;;  %v1236_v32 = vld [vmem:[#allocation6 + $0x2f0] ss:$8 sps:$4 sm:$0xff]  }
  0x45   :  { %724 = vmatprep.subr.bf16.mxu1 %v1166_v33  ;;  %v1241_v33 = vld [vmem:[#allocation6 + $0x2e4] ss:$8 sps:$4 sm:$0xff]  }
  0x47   :  { %684 = vmatpush2.bf16.msra.mxu0 %v1168_v34  ;;  %v1239_v34 = vld [vmem:[#allocation6 + $0x2e0] ss:$8 sps:$4 sm:$0xff]  }
  0x48   :  { %725 = vmatpush2.bf16.msra.mxu1 %v1169_v35  ;;  %685 = vmatprep.subr.bf16.mxu0 %v1170_v36  ;;  %v1244_v35 = vld [vmem:[#allocation6 + $0x2d4] ss:$8 sps:$4 sm:$0xff]   ;;  %v1242_v36 = vld [vmem:[#allocation6 + $0x2d0] ss:$8 sps:$4 sm:$0xff]  }
  0x49   :  { %726 = vmatprep.subr.bf16.mxu1 %v1172_v37  ;;  %v1247_v37 = vld [vmem:[#allocation6 + $0x2c4] ss:$8 sps:$4 sm:$0xff]  }
  0x4b   :  { %686 = vmatpush2.bf16.msra.mxu0 %v1174_v38  ;;  %v1245_v38 = vld [vmem:[#allocation6 + $0x2c0] ss:$8 sps:$4 sm:$0xff]  }
  0x4c   :  { %727 = vmatpush2.bf16.msra.mxu1 %v1175_v39  ;;  %687 = vmatprep.subr.bf16.mxu0 %v1176_v40  ;;  %v1250_v39 = vld [vmem:[#allocation6 + $0x2b4] ss:$8 sps:$4 sm:$0xff]   ;;  %v1248_v40 = vld [vmem:[#allocation6 + $0x2b0] ss:$8 sps:$4 sm:$0xff]  }
  0x4d   :  { %728 = vmatprep.subr.bf16.mxu1 %v1178_v41  ;;  %v1253_v41 = vld [vmem:[#allocation6 + $0x2a4] ss:$8 sps:$4 sm:$0xff]  }
  0x4f   :  { %688 = vmatpush2.bf16.msra.mxu0 %v1180_v42  ;;  %v1251_v42 = vld [vmem:[#allocation6 + $0x2a0] ss:$8 sps:$4 sm:$0xff]  }
  0x50   :  { %729 = vmatpush2.bf16.msra.mxu1 %v1181_v43  ;;  %689 = vmatprep.subr.bf16.mxu0 %v1182_v44  ;;  %v1256_v43 = vld [vmem:[#allocation6 + $0x294] ss:$8 sps:$4 sm:$0xff]   ;;  %v1254_v44 = vld [vmem:[#allocation6 + $0x290] ss:$8 sps:$4 sm:$0xff]  }
  0x51   :  { %730 = vmatprep.subr.bf16.mxu1 %v1184_v45  ;;  %v1262_v45 = vld [vmem:[#allocation6 + $0x284] ss:$8 sps:$4 sm:$0xff]  }
  0x53   :  { %690 = vmatpush2.bf16.msra.mxu0 %v1186_v47  ;;  %v65_v47 = vld [vmem:[#allocation3 + $0x20] sm:$0xff] }
  0x54   :  { %731 = vmatpush2.bf16.msra.mxu1 %v1187_v48  ;;  %691 = vmatprep.subr.bf16.mxu0 %v1188_v51  ;;  %v72_v48 = vpack.c.bf16 %v65_v47, %v65_v47  ;;  %v1422_v51 = vsub.f32 0.0, %v1417_v49  ;;  %v852_v47 = vmax.f32 %v1417_v49, 0.0 }
  0x55   :  { %732 = vmatprep.subr.bf16.mxu1 %v1190_v53  ;;  %v1426_v53 = vsub.f32 0.0, %v1419_v50 }
  0x57   :  { %692 = vmatpush2.bf16.msra.mxu0 %v1192_v54  ;;  %v855_v54 = vand.u32 2147483647, %v1419_v50 }
  0x58   :  { %733 = vmatpush2.bf16.msra.mxu1 %v1193_v55  ;;  %693 = vmatprep.subr.bf16.mxu0 %v1194_v56  ;;  %v856_v55 = vsub.f32 0.0, %v854_v52  ;;  %v890_v56 = vand.u32 2147483647, %v1422_v51 }
  0x59   :  { %734 = vmatprep.subr.bf16.mxu1 %v1196_v57  ;;  %v857_v57 = vsub.f32 0.0, %v855_v54 }
  0x5b   :  { %694 = vmatpush2.bf16.msra.mxu0 %v1198_v58  ;;  %v891_v58 = vand.u32 2147483647, %v1426_v53 }
  0x5c   :  { %735 = vmatpush2.bf16.msra.mxu1 %v1199_v59  ;;  %695 = vmatprep.subr.bf16.mxu0 %v1200_v60  ;;  %v858_v59 = vmul.f32 1.442695, %v856_v55  ;;  %v892_v60 = vsub.f32 0.0, %v890_v56  ;;  %v853_v56 = vmax.f32 %v1419_v50, 0.0 }
  0x5d   :  { %736 = vmatprep.subr.bf16.mxu1 %v1202_v61  ;;  %v860_v61 = vmul.f32 1.442695, %v857_v57 }
  0x5e   :  { %1263 = vpow2.f32 %v858_v59 }
  0x5f   :  { %696 = vmatpush2.bf16.msra.mxu0 %v1204_v62  ;;  %v893_v62 = vsub.f32 0.0, %v891_v58  ;;  %1265 = vpow2.f32 %v860_v61  ;;  %v888_v61 = vmax.f32 %v1422_v51, 0.0 }
  0x60   :  { %737 = vmatpush2.bf16.msra.mxu1 %v1205_v63  ;;  %697 = vmatprep.subr.bf16.mxu0 %v1206_v0  ;;  %v894_v63 = vmul.f32 1.442695, %v892_v60 }
  0x61   :  { %738 = vmatprep.subr.bf16.mxu1 %v1208_v1  ;;  %v896_v0 = vmul.f32 1.442695, %v893_v62  ;;  %v842_v1 = vmul.f32 1.442695, %v1422_v51 }
  0x62   :  { %1267 = vpow2.f32 %v894_v63 }
  0x63   :  { %698 = vmatpush2.bf16.msra.mxu0 %v1210_v2  ;;  %1269 = vpow2.f32 %v896_v0  ;;  %v889_v0 = vmax.f32 %v1426_v53, 0.0 }
  0x64   :  { %739 = vmatpush2.bf16.msra.mxu1 %v1211_v3  ;;  %749 = vmatprep.subr.bf16.mxu0 %v1214_v6  ;;  %v844_v3 = vmul.f32 1.442695, %v1426_v53  ;;  %1271 = vpow2.f32 %v842_v1 }
  0x65   :  { %804 = vmatprep.subr.bf16.mxu1 %v1259_v12 }
  0x66   :  { %700 = vmatmul.mubr.bf16.vlgmr.msra.gmra.mxu0 %v68_v7  ;;  %1273 = vpow2.f32 %v844_v3 }
  0x67   :  { %741 = vmatmul.mubr.bf16.vlgmr.msra.gmra.mxu1 %v70_v8  ;;  %750 = vmatpush1.bf16.msra.mxu0 %v1212_v9 }
  0x68   :  { %751 = vmatprep.subr.bf16.mxu0 %v1217_v10  ;;  %805 = vmatpush1.bf16.msra.mxu1 %v1257_v11 }
  0x69   :  { %822 = vmatprep.mubr.bf16.mxu1 %v1386_v18  ;;  %781 = vmatprep.mubr.bf16.mxu0 %v73_v16 }
  0x6b   :  { %752 = vmatpush1.bf16.msra.mxu0 %v1215_v14  ;;  %v1264_v2 = vpop.eup %1263 }
  0x6c   :  { %753 = vmatprep.subr.bf16.mxu0 %v1220_v17  ;;  %v1266_v4 = vpop.eup %1265  ;;  %v862_v5 = vadd.f32 1.0, %v1264_v2 }
  0x6d   :  { %v871_v7 = vadd.f32 1.0, %v1266_v4 }
  0x6e   :  { %1275 = vlog2.f32 %v862_v5 }
  0x6f   :  { %1108 = vmatmul.mubr.msk.bf16.vlgmr.msra.gmra.mxu1 %vm663_vm0, %v74_v19  ;;  %754 = vmatpush1.bf16.msra.mxu0 %v1218_v20  ;;  %v1268_v6 = vpop.eup %1267  ;;  %1277 = vlog2.f32 %v871_v7 }
  0x70   :  { %755 = vmatprep.subr.bf16.mxu0 %v1223_v21  ;;  %v1270_v8 = vpop.eup %1269  ;;  %v898_v11 = vadd.f32 1.0, %v1268_v6  ;;  %v865_v21 = vmul.f32 -0.5, %v1264_v2 }
  0x71   :  { %v907_v14 = vadd.f32 1.0, %v1270_v8  ;;  %v1272_v19 = vpop.eup %1271 }
  0x72   :  { %1279 = vlog2.f32 %v898_v11 }
  0x73   :  { %756 = vmatpush1.bf16.msra.mxu0 %v1221_v22  ;;  %1281 = vlog2.f32 %v907_v14  ;;  %v1274_v22 = vpop.eup %1273 }
  0x74   :  { %757 = vmatprep.subr.bf16.mxu0 %v1226_v23 }
  0x77   :  { %758 = vmatpush1.bf16.msra.mxu0 %v1224_v24  ;;  %v874_v24 = vmul.f32 -0.5, %v1266_v4 }
  0x78   :  { %759 = vmatprep.subr.bf16.mxu0 %v1229_v25  ;;  %v846_v25 = vadd.f32 1.0, %v1272_v19 }
  0x7a   :  { %1283 = vrcp.f32 %v846_v25 }
  0x7b   :  { %760 = vmatpush1.bf16.msra.mxu0 %v1227_v26  ;;  %v866_v26 = vadd.f32 1.0, %v865_v21 }
  0x7c   :  { %761 = vmatprep.subr.bf16.mxu0 %v1232_v27 }
  0x7f   :  { %762 = vmatpush1.bf16.msra.mxu0 %v1230_v28  ;;  %v901_v28 = vmul.f32 -0.5, %v1268_v6 }
  0x80   :  { %763 = vmatprep.subr.bf16.mxu0 %v1235_v29  ;;  %v1276_v29 = vpop.eup %1275 }
  0x83   :  { %764 = vmatpush1.bf16.msra.mxu0 %v1233_v30  ;;  %v868_v30 = vand.u32 2147483647, %v1264_v2 }
  0x84   :  { %765 = vmatprep.subr.bf16.mxu0 %v1238_v31  ;;  %v847_v31 = vadd.f32 1.0, %v1274_v22 }
  0x85   :  { %vm1445_vm1 = vcmp.lt.f32.partialorder %v868_v30, 0.0004427343 }
  0x86   :  { %1285 = vrcp.f32 %v847_v31  ;;  %v972_v31 = vlaneseq }
  0x87   :  { %766 = vmatpush2.bf16.msra.mxu0 %v1236_v32  ;;  %v875_v32 = vadd.f32 1.0, %v874_v24 }
  0x88   :  { %767 = vmatprep.subr.bf16.mxu0 %v1241_v33 }
  0x8b   :  { %768 = vmatpush2.bf16.msra.mxu0 %v1239_v34  ;;  %v910_v34 = vmul.f32 -0.5, %v1270_v8 }
  0x8c   :  { %769 = vmatprep.subr.bf16.mxu0 %v1244_v35  ;;  %v1278_v35 = vpop.eup %1277 }
  0x8f   :  { %770 = vmatpush2.bf16.msra.mxu0 %v1242_v36  ;;  %v877_v36 = vand.u32 2147483647, %v1266_v4 }
  0x90   :  { %771 = vmatprep.subr.bf16.mxu0 %v1247_v37  ;;  %v864_v37 = vmul.f32 0.6931472, %v1276_v29 }
  0x91   :  { %vm878_vm2 = vcmp.lt.f32.partialorder %v877_v36, 0.0004427343 }
  0x93   :  { %772 = vmatpush2.bf16.msra.mxu0 %v1245_v38  ;;  %v867_v38 = vmul.f32 %v1264_v2, %v866_v26 }
  0x94   :  { %773 = vmatprep.subr.bf16.mxu0 %v1250_v39  ;;  %v902_v39 = vadd.f32 1.0, %v901_v28 }
  0x95   :  { %v870_v52 = vsel %vm1445_vm1, %v867_v38, %v864_v37  ;;  %v973_v38 = vshrl.u32 %v972_v31, 7 }
  0x96   :  { %v903_v55 = vmul.f32 %v1268_v6, %v902_v39  ;;  %v880_v60 = vadd.f32 %v870_v52, %v852_v47 }
  0x97   :  { %774 = vmatpush2.bf16.msra.mxu0 %v1248_v40  ;;  %v1280_v40 = vpop.eup %1279  ;;  %v984_v52 = vsub.s32 0, %v973_v38 }
  0x98   :  { %775 = vmatprep.subr.bf16.mxu0 %v1253_v41  ;;  %v900_v54 = vmul.f32 0.6931472, %v1280_v40  ;;  %v884_v2 = vadd.f32 1.0, %v880_v60  ;;  %v882_v11 = vadd.f32 0.1, %v880_v60 }
  0x9a   :  { %v946_v14 = vrot.slane %v884_v2, 1 }
  0x9b   :  { %776 = vmatpush2.bf16.msra.mxu0 %v1251_v42  ;;  %v904_v42 = vand.u32 2147483647, %v1268_v6 }
  0x9c   :  { %777 = vmatprep.subr.bf16.mxu0 %v1256_v43  ;;  %v873_v43 = vmul.f32 0.6931472, %v1278_v35  ;;  %v950_v21 = vmul.f32 %v946_v14, %v882_v11 }
  0x9d   :  { %vm905_vm3 = vcmp.lt.f32.partialorder %v904_v42, 0.0004427343 }
  0x9e   :  { %v906_v62 = vsel %vm905_vm3, %v903_v55, %v900_v54  ;;  %1287 = vrcp.f32 %v950_v21 }
  0x9f   :  { %778 = vmatpush2.bf16.msra.mxu0 %v1254_v44  ;;  %v876_v44 = vmul.f32 %v1266_v4, %v875_v32  ;;  %v916_v3 = vadd.f32 %v906_v62, %v888_v61 }
  0xa0   :  { %779 = vmatprep.subr.bf16.mxu0 %v1262_v45  ;;  %v911_v45 = vadd.f32 1.0, %v910_v34 }
  0xa1   :  { %v879_v57 = vsel %vm878_vm2, %v876_v44, %v873_v43  ;;  %v974_v44 = vsub.s32 7, %v973_v38 }
  0xa2   :  { %v912_v59 = vmul.f32 %v1270_v8, %v911_v45  ;;  %v881_v63 = vadd.f32 %v879_v57, %v853_v56 }
  0xa3   :  { %780 = vmatpush2.bf16.msra.mxu0 %v1260_v46  ;;  %v1282_v46 = vpop.eup %1281  ;;  %v975_v57 = vrot.slane %v1417_v49, %v974_v44  ;;  %v979_v62 = vrot.slane %v1419_v50, %v974_v44 }
  0xa4   :  { %v909_v58 = vmul.f32 0.6931472, %v1282_v46  ;;  %v1284_v4 = vpop.eup %1283  ;;  %v885_v5 = vadd.f32 1.0, %v881_v63 }
  0xa5   :  { %v1286_v7 = vpop.eup %1285  ;;  %v932_v26 = vrot.slane %v1284_v4, 1  ;;  %v938_v29 = vrot.slane %v1284_v4, 2 }
  0xa6   :  { %782 = vmatmul.mubr.bf16.vlgmr.msra.gmra.mxu0 %v72_v48  ;;  %v913_v48 = vand.u32 2147483647, %v1270_v8  ;;  %v883_v8 = vadd.f32 0.1, %v881_v63 }
  0xa7   :  { %v936_v28 = vmul.f32 %v1284_v4, %v932_v26 }
  0xa8   :  { %vm914_vm4 = vcmp.lt.f32.partialorder %v913_v48, 0.0004427343 }
  0xa9   :  { %v915_v1 = vsel %vm914_vm4, %v912_v59, %v909_v58  ;;  %v942_v35 = vmul.f32 %v938_v29, %v936_v28 }
  0xaa   :  { %v917_v6 = vadd.f32 %v915_v1, %v889_v0 }
  0xab   :  { %v1288_v30 = vpop.eup %1287 }
  0xac   :  { %v921_v51 = vrot.slane %v917_v6, 7  ;;  %v956_v36 = vrot.slane %v1288_v30, 3 }
  0xae   :  { %v960_v42 = vmul.f32 %v956_v36, %v942_v35 }
 0x126   :  { %v1433_v9 = vpop.f32.mrf.mxu0 }
 0x127   :  { %v1435_v10 = vpop.f32.mrf.mxu1 }
 0x128   :  { %v1437_v12 = vpop.f32.mrf.mxu0  ;;  %v743_v47 = vadd.f32 %v1435_v10, %v1433_v9 }
 0x129   :  { %v1439_v13 = vpop.f32.mrf.mxu1 }
 0x12a   :  { %v705_v15 = vpop.f32.mrf.mxu0  ;;  %v745_v55 = vadd.f32 %v1439_v13, %v1437_v12 }
 0x12b   :  { %v746_v16 = vpop.f32.mrf.mxu1  ;;  %v886_v15 = vsub.f32 0.0, %v1284_v4 }
 0x12c   :  { %v706_v17 = vpop.f32.mrf.mxu0  ;;  %v920_v16 = vrot.slane %v916_v3, 7 }
 0x12d   :  { %v747_v18 = vpop.f32.mrf.mxu1  ;;  %v947_v17 = vrot.slane %v885_v5, 1 }
 0x12e   :  { %v887_v18 = vsub.f32 0.0, %v1286_v7  ;;  %v924_v19 = vmul.f32 %v920_v16, %v886_v15 }
 0x12f   :  { %v1441_v20 = vpop.f32.mrf.mxu1  ;;  %v951_v24 = vmul.f32 %v947_v17, %v883_v8 }
 0x130   :  { %v925_v22 = vmul.f32 %v921_v51, %v887_v18  ;;  %v926_v53 = vmul.f32 1.442695, %v924_v19 }
 0x131   :  { %v1443_v23 = vpop.f32.mrf.mxu1  ;;  %1289 = vrcp.f32 %v951_v24 }
 0x132   :  { %v928_v25 = vmul.f32 1.442695, %v925_v22  ;;  %1291 = vpow2.f32 %v926_v53 }
 0x133   :  { %v828_v27 = vpop.f32.mrf.mxu1 }
 0x134   :  { %1293 = vpow2.f32 %v928_v25  ;;  %v933_v27 = vrot.slane %v1286_v7, 1 }
 0x135   :  { %v829_v33 = vpop.f32.mrf.mxu1 }
 0x136   :  { %v937_v32 = vmul.f32 %v1286_v7, %v933_v27  ;;  %v939_v33 = vrot.slane %v1286_v7, 2 }
 0x138   :  { %v943_v39 = vmul.f32 %v939_v33, %v937_v32 }
 0x13e   :  { %v1290_v34 = vpop.eup %1289 }
 0x13f   :  { %v1292_v37 = vpop.eup %1291  ;;  %v957_v40 = vrot.slane %v1290_v34, 3 }
 0x140   :  { %v964_v43 = vrot.slane %v1292_v37, 6 }
 0x141   :  { %v1294_v41 = vpop.eup %1293  ;;  %v961_v45 = vmul.f32 %v957_v40, %v943_v39 }
 0x142   :  { %v965_v46 = vrot.slane %v1294_v41, 6  ;;  %v968_v48 = vmul.f32 %v964_v43, %v960_v42 }
 0x144   :  { %v969_v58 = vmul.f32 %v965_v46, %v961_v45  ;;  %v985_v63 = vrot.slane %v968_v48, %v984_v52 }
 0x146   :  { %v989_v10 = vrot.slane %v969_v58, %v984_v52 }
 0x166   :  { %v783_v54 = vpop.f32.mrf.mxu0 }
 0x167   :  { %v784_v56 = vadd.f32 %v783_v54, %v743_v47 }
 0x168   :  { %v785_v59 = vpop.f32.mrf.mxu0 }
 0x169   :  { %v825_v60 = vadd.f32 %v1441_v20, %v784_v56  ;;  %v786_v61 = vadd.f32 %v785_v59, %v745_v55 }
 0x16a   :  { %v787_v0 = vpop.f32.mrf.mxu0 }
 0x16b   :  { %v980_v1 = vadd.f32 %v975_v57, %v825_v60  ;;  %v827_v9 = vadd.f32 %v1443_v23, %v786_v61 }
 0x16c   :  { %v788_v2 = vpop.f32.mrf.mxu0 }
 0x16d   :  { %v981_v12 = vadd.f32 %v979_v62, %v827_v9  ;;  %v990_v13 = vmul.f32 %v985_v63, %v980_v1 }
 0x16f   :  { %v991_v3 = vmul.f32 %v989_v10, %v981_v12  ;;  %992 = vst [vmem:[#allocation9] sm:$0xff] %v990_v13 }
 0x171   :  { %993 = vst [vmem:[#allocation9 + $0x8] sm:$0xff] %v991_v3 }
 0x172   :  { %1366 = shalt.err (!%p1363_p5)
}
 0x173   :  { %1003 = dma.vmem_to_hbm [thread:$0]  %s1001_s2, 256, %s1469_s3, [#allocation5]  }
 0x174   :  { %1379 = dma.done.wait [#allocation5], 256  }
 0x175   :  { %1380 = vsyncadd [#allocation5], 4294967040 }
 0x176   :  { %1007 = vsyncpa [#allocation4], 1 }
 0x177   :  { %1008 = vsyncpa [#allocation7], 1 }
 0x178   :  { %1009 = vsyncpa [#allocation5], 1 }

</bundles_post_ra>
